<compile_context>
chip_gen: v7x
topology: tpu7x:2x2x1
jax: 0.10.0
libtpu: 0.0.40
codegen_flags: <defaults>
</compile_context>

<pallas_src>
import jax
import jax.numpy as jnp
from jax import lax
from jax.experimental import pallas as pl
from jax.experimental.pallas import tpu as pltpu


def _linear_kernel_fused(x_ref, w_ref, b_ref, o_ref):
    """Single-K-step linear: o = x @ w.T + b (no accumulator scratch)."""
    # x_ref: (tm, K)  w_ref: (tn, K)  b_ref: (1, tn)  o_ref: (tm, tn)
    acc = lax.dot_general(
        x_ref[...], w_ref[...],
        dimension_numbers=(((1,), (1,)), ((), ())),
        preferred_element_type=jnp.float32,
    )
    o_ref[...] = (acc + b_ref[...].astype(jnp.float32)).astype(o_ref.dtype)


def _linear_kernel_acc(x_ref, w_ref, b_ref, o_ref, acc_ref):
    """K-tiled linear with resident f32 accumulator (K = trailing grid axis)."""
    k = pl.program_id(2)

    @pl.when(k == 0)
    def _():
        acc_ref[...] = jnp.zeros_like(acc_ref)

    acc_ref[...] += lax.dot_general(
        x_ref[...], w_ref[...],
        dimension_numbers=(((1,), (1,)), ((), ())),
        preferred_element_type=jnp.float32,
    )

    @pl.when(k == pl.num_programs(2) - 1)
    def _():
        o_ref[...] = (acc_ref[...] + b_ref[...].astype(jnp.float32)).astype(o_ref.dtype)


def _pick_aligned_divisor(full, preferred, align):
    """Largest t <= preferred with t % align == 0 and full % t == 0, else None."""
    t = (preferred // align) * align
    while t >= align:
        if full % t == 0:
            return t
        t -= align
    return None


def generator_forward(x, weight, bias, *, tm=512, tn=1024, max_tk=4096,
                      use_bf16=True, out_dtype=None, weight_buffering=2,
                      vmem_limit_bytes=64 * 1024 * 1024):
    """Pallas equivalent of nn.Linear(d_model, vocab) applied to x.

    Args:
      x:      (batch, seq, d_model)
      weight: (vocab, d_model) — PyTorch nn.Linear layout, NOT transposed here.
              For best performance pass it already converted to bf16 (done once
              at init); otherwise it is cast here (extra weight copy per call).
      bias:   (vocab,)
      out_dtype: logits dtype; defaults to x.dtype (use jnp.bfloat16 to halve
              output writeback traffic if the consumer accepts it).
      weight_buffering: pipelining depth for the weight tiles (>2 helps hide
              exposed weight DMA at decode-like shapes).
    Returns:
      (batch, seq, vocab) logits.
    """
    batch, seq, d_model = x.shape
    vocab, d_model_w = weight.shape
    assert d_model_w == d_model, "weight must be (vocab, d_model)"
    m = batch * seq
    if out_dtype is None:
        out_dtype = x.dtype

    x2d = x.reshape(m, d_model)
    w = weight
    if use_bf16:
        if x2d.dtype == jnp.float32:
            x2d = x2d.astype(jnp.bfloat16)
        if w.dtype == jnp.float32:
            # Fallback cast; prefer converting the weight once outside this call.
            w = w.astype(jnp.bfloat16)
    b2d = bias.reshape(1, vocab).astype(jnp.float32)

    # ---- tile selection: no operand padding; K is never ragged ----
    if m <= tm:
        tm = m
    if vocab <= tn:
        tn = vocab
    else:
        cand = _pick_aligned_divisor(vocab, tn, 128)
        tn = cand if cand is not None else (tn // 128) * 128  # ragged N tail (masked)

    if d_model <= max_tk:
        tk, multi_k = d_model, False
    else:
        cand = _pick_aligned_divisor(d_model, max_tk, 128)
        if cand is not None:
            tk, multi_k = cand, True
        else:
            # Rare: huge, unaligned d_model. Keep one K step (always correct, no
            # padding); the VMEM-fit loop below shrinks tm/tn to compensate.
            tk, multi_k = d_model, False

    x_it = jnp.dtype(x2d.dtype).itemsize
    w_it = jnp.dtype(w.dtype).itemsize
    o_it = jnp.dtype(out_dtype).itemsize

    def _vmem_estimate(tm_, tn_, tk_):
        est = 2 * (tm_ * tk_ * x_it + tn_ * tk_ * w_it + tm_ * tn_ * o_it + tn_ * 4)
        if multi_k:
            est += tm_ * tn_ * 4
        return est

    budget = int(0.75 * vmem_limit_bytes)
    while _vmem_estimate(tm, tn, tk) > budget:
        if tn >= 512 and tn % 256 == 0:
            tn //= 2
        elif tm >= 128 and tm % 16 == 0:
            tm //= 2
        else:
            break

    gm = pl.cdiv(m, tm)
    gn = pl.cdiv(vocab, tn)
    gk = d_model // tk if multi_k else 1

    if multi_k:
        grid = (gn, gm, gk)
        x_map = lambda j, i, k: (i, k)
        w_map = lambda j, i, k: (j, k)
        b_map = lambda j, i, k: (0, j)
        o_map = lambda j, i, k: (i, j)
        semantics = ("parallel", "parallel", "arbitrary")
        kernel = _linear_kernel_acc
        scratch = [pltpu.VMEM((tm, tn), jnp.float32)]
    else:
        grid = (gn, gm)
        x_map = lambda j, i: (i, 0)
        w_map = lambda j, i: (j, 0)
        b_map = lambda j, i: (0, j)
        o_map = lambda j, i: (i, j)
        semantics = ("parallel", "parallel")
        kernel = _linear_kernel_fused
        scratch = []

    # With N outermost and the inner M sweep revisiting the same weight block,
    # the weight is streamed ~once (single-K) or gm times (multi-K); x is
    # streamed once per N block.
    bytes_accessed = (
        m * d_model * x_it * gn
        + vocab * d_model * w_it * (gm if multi_k else 1)
        + vocab * 4
        + m * vocab * o_it
    )
    cost = pl.CostEstimate(flops=2 * m * d_model * vocab, transcendentals=0,
                           bytes_accessed=int(bytes_accessed))

    w_spec_kwargs = {}
    if weight_buffering != 2:
        w_spec_kwargs = dict(pipeline_mode=pl.Buffered(weight_buffering))

    out2d = pl.pallas_call(
        kernel,
        out_shape=jax.ShapeDtypeStruct((m, vocab), out_dtype),
        grid_spec=pltpu.PrefetchScalarGridSpec(
            num_scalar_prefetch=0,
            grid=grid,
            in_specs=[
                pl.BlockSpec((tm, tk), x_map),                   # x:  (M, K)
                pl.BlockSpec((tn, tk), w_map, **w_spec_kwargs),  # W:  (N, K)
                pl.BlockSpec((1, tn), b_map),                    # b:  (1, N)
            ],
            out_specs=pl.BlockSpec((tm, tn), o_map),
            scratch_shapes=scratch,
        ),
        compiler_params=pltpu.CompilerParams(
            dimension_semantics=semantics,
            vmem_limit_bytes=vmem_limit_bytes,
        ),
        cost_estimate=cost,
    )(x2d, w, b2d)

    return out2d.reshape(batch, seq, vocab)


if __name__ == "__main__":
    key = jax.random.PRNGKey(0)

    def _check(batch, seq, d_model, vocab, subkey):
        kx, kw, kb = jax.random.split(subkey, 3)
        x = jax.random.normal(kx, (batch, seq, d_model), dtype=jnp.float32)
        weight = jax.random.normal(kw, (vocab, d_model), dtype=jnp.float32) * 0.02
        bias = jax.random.normal(kb, (vocab,), dtype=jnp.float32) * 0.02

        # Convert the weight to bf16 once ("at init") so the kernel DMAs half
        # the bytes and needs no per-call cast of the big matrix.
        weight_bf16 = weight.astype(jnp.bfloat16)

        out = generator_forward(x, weight_bf16, bias)
        out = jax.block_until_ready(out)

        ref = x @ weight.T + bias   # same math as torch F.linear
        assert out.shape == (batch, seq, vocab)
        err = float(jnp.max(jnp.abs(out - ref)))
        # Tolerance relaxed because the MXU path uses bf16 tiles with f32 accum.
        assert jnp.allclose(out, ref, atol=2e-2, rtol=2e-2), err

    # Small shape (single block in every grid dimension).
    _check(batch=2, seq=8, d_model=32, vocab=64, subkey=jax.random.fold_in(key, 0))
    # Slightly larger shape that exercises tiling along the vocab (N) axis.
    _check(batch=2, seq=16, d_model=256, vocab=2304, subkey=jax.random.fold_in(key, 1))

    print("KERNEL_OK")
</pallas_src>

<mosaic_0001>
module attributes {stable_mosaic.version = 11 : i64} {
  func.func @_linear_kernel_fused(%arg0: i32, %arg1: i32, %arg2: memref<16x32xbf16, #tpu.memory_space<vmem>>, %arg3: memref<64x32xbf16, #tpu.memory_space<vmem>>, %arg4: memref<1x64xf32, #tpu.memory_space<vmem>>, %arg5: memref<16x64xf32, #tpu.memory_space<vmem>>) attributes {dimension_semantics = [#tpu.dimension_semantics<parallel>, #tpu.dimension_semantics<parallel>], iteration_bounds = array<i64: 1, 1>, scalar_prefetch = 0 : i64, scratch_operands = 0 : i64, tpu.core_type = #tpu.core_type<tc>, window_params = [{transform_indices = @transform_0, window_bounds = array<i64: 16, 32>}, {transform_indices = @transform_1, window_bounds = array<i64: 64, 32>}, {transform_indices = @transform_2, window_bounds = array<i64: 1, 64>}, {transform_indices = @transform_3, window_bounds = array<i64: 16, 64>}]} {
    %c0 = arith.constant 0 : index
    %c0_0 = arith.constant 0 : index
    %0 = vector.load %arg2[%c0, %c0_0] : memref<16x32xbf16, #tpu.memory_space<vmem>>, vector<16x32xbf16>
    %c0_1 = arith.constant 0 : index
    %c0_2 = arith.constant 0 : index
    %1 = vector.load %arg3[%c0_1, %c0_2] : memref<64x32xbf16, #tpu.memory_space<vmem>>, vector<64x32xbf16>
    %cst = arith.constant dense<0.000000e+00> : vector<16x64xf32>
    %2 = tpu.matmul %0, %1, %cst {dimension_numbers = #tpu.dot_dimension_numbers<[1], [1], [0], [0], [0, 0, 1, 0], [], []>} : vector<16x32xbf16>, vector<64x32xbf16>, vector<16x64xf32> -> vector<16x64xf32>
    %c0_3 = arith.constant 0 : index
    %c0_4 = arith.constant 0 : index
    %3 = vector.load %arg4[%c0_3, %c0_4] : memref<1x64xf32, #tpu.memory_space<vmem>>, vector<1x64xf32>
    %4 = vector.broadcast %3 : vector<1x64xf32> to vector<16x64xf32>
    %5 = arith.addf %2, %4 : vector<16x64xf32>
    %c0_5 = arith.constant 0 : index
    %c0_6 = arith.constant 0 : index
    %6 = vector.load %arg5[%c0_5, %c0_6] : memref<16x64xf32, #tpu.memory_space<vmem>>, vector<16x64xf32>
    tpu.vector_store %arg5[%c0_5, %c0_6], %5 {strides = array<i32>} : memref<16x64xf32, #tpu.memory_space<vmem>>, vector<16x64xf32>,
    return
  }
  func.func @transform_0(%arg0: i32, %arg1: i32) -> (i32, i32) {
    %c0_i32 = arith.constant 0 : i32
    %c0_i32_0 = arith.constant 0 : i32
    return %arg1, %c0_i32 : i32, i32
  }
  func.func @transform_1(%arg0: i32, %arg1: i32) -> (i32, i32) {
    %c0_i32 = arith.constant 0 : i32
    %c0_i32_0 = arith.constant 0 : i32
    return %arg0, %c0_i32 : i32, i32
  }
  func.func @transform_2(%arg0: i32, %arg1: i32) -> (i32, i32) {
    %c0_i32 = arith.constant 0 : i32
    %c0_i32_0 = arith.constant 0 : i32
    return %c0_i32, %arg0 : i32, i32
  }
  func.func @transform_3(%arg0: i32, %arg1: i32) -> (i32, i32) {
    %c0_i32 = arith.constant 0 : i32
    return %arg1, %arg0 : i32, i32
  }
}

</mosaic_0001>

<bundles_post_ra>
// kernel: tpu_custom_call.1
= control target key start
LH: loop header
LB: loop body
LE: loop exit
PB: predicated region body
PF: predicated region fallthrough
CT: control target
= control target key end

     0   :  { %8 = vsyncpa [#allocation3], 0  ;;  %s398_s0 = inlined_call_operand.hbm [shape: bf16[16,32], index: 0, kind: input, shape index: {}]   ;;  %s399_s1 = inlined_call_operand.hbm [shape: bf16[64,32], index: 1, kind: input, shape index: {}]   ;;  %s400_s2 = inlined_call_operand.hbm [shape: f32[1,64], index: 2, kind: input, shape index: {}]   ;;  %s401_s3 = inlined_call_operand.hbm [shape: f32[16,64], index: 3, kind: output, shape index: {}]  }
   0x1   :  { %9 = vsyncpa [#allocation6], 0 }
   0x2   :  { %10 = vsyncpa [#allocation4], 0  ;;  %s308_s12 = smov [#allocation5]   ;;  %s309_s14 = smov [#allocation2]  }
   0x3   :  { %s28_s13 = sshll.u32 %s308_s12, 4  ;;  %s16_s15 = sshll.u32 %s309_s14, 4  ;;  %s29_s13 = int_to_ptr.vmem [resolvable:$true] %s28_s13  ;;  %s338_s15 = int_to_ptr.vmem [resolvable:$true] %s16_s15 }
   0x4   :  { %s214_s18 = scalar_lea.hbm %s399_s1, 512 }
   0x5   :  { %p215_p0 = scmp.ne.s32.totalorder %s399_s1, %s214_s18  ;;  %p218_p1 = scmp.lt.u32.totalorder %s214_s18, %s399_s1 }
   0x7   :  { %p220_p2 = pnand %p218_p1, %p215_p0 }
   0x9   :  { %223 = shalt.err (!%p220_p2)
}
   0xa   :  { %s224_s23 = scalar_lea.vmem %s29_s13, 512  ;;  %p229_p4 = scmp.lt.s32.totalorder %s29_s13, %s29_s13 }
   0xb   :  { %p225_p3 = scmp.ne.s32.totalorder %s29_s13, %s224_s23  ;;  %p230_p5 = scmp.lt.s32.totalorder %s224_s23, %s224_s23 }
   0xd   :  { %p231_p6 = por %p230_p5, %p229_p4 }
   0xf   :  { %p232_p7 = pnand %p231_p6, %p225_p3 }
  0x11   :  { %235 = shalt.err (!%p232_p7)
}
  0x12   :  { %s310_s24 = smov 64   ;;  %s311_s25 = smov 4  }
  0x13   :  { %34 = dma.hbm_to_vmem [thread:$0]  %s399_s1, 512, %s29_s13, [#allocation6], %s310_s24, %s310_s24, %s311_s25  }
  0x14   :  { %s236_s30 = scalar_lea.hbm %s398_s0, 128 }
  0x15   :  { %p237_p8 = scmp.ne.s32.totalorder %s398_s0, %s236_s30  ;;  %p240_p9 = scmp.lt.u32.totalorder %s236_s30, %s398_s0 }
  0x17   :  { %p242_p10 = pnand %p240_p9, %p237_p8 }
  0x19   :  { %245 = shalt.err (!%p242_p10)
}
  0x1a   :  { %s246_s8 = scalar_lea.vmem %s338_s15, 128  ;;  %p251_p12 = scmp.lt.s32.totalorder %s338_s15, %s338_s15 }
  0x1b   :  { %p247_p11 = scmp.ne.s32.totalorder %s338_s15, %s246_s8  ;;  %p252_p13 = scmp.lt.s32.totalorder %s246_s8, %s246_s8 }
  0x1d   :  { %p253_p0 = por %p252_p13, %p251_p12 }
  0x1f   :  { %p254_p1 = pnand %p253_p0, %p247_p11 }
  0x21   :  { %257 = shalt.err (!%p254_p1)
}
  0x22   :  { %22 = dma.hbm_to_vmem [thread:$0]  %s398_s0, 128, %s338_s15, [#allocation3], %s310_s24, %s310_s24, %s311_s25  }
  0x23   :  { %s312_s10 = smov [#allocation7]   ;;  %s258_s14 = scalar_lea.hbm %s400_s2, 16 }
  0x24   :  { %s41_s11 = sshll.u32 %s312_s10, 4  ;;  %p259_p2 = scmp.ne.s32.totalorder %s400_s2, %s258_s14  ;;  %s42_s11 = int_to_ptr.vmem [resolvable:$true] %s41_s11 }
  0x25   :  { %p262_p3 = scmp.lt.u32.totalorder %s258_s14, %s400_s2 }
  0x27   :  { %p264_p4 = pnand %p262_p3, %p259_p2 }
  0x29   :  { %267 = shalt.err (!%p264_p4)
}
  0x2a   :  { %s268_s20 = scalar_lea.vmem %s42_s11, 16  ;;  %s272_s0 = scalar_lea.vmem %s42_s11, 32 }
  0x2b   :  { %p269_p5 = scmp.ne.s32.totalorder %s42_s11, %s268_s20  ;;  %p273_p6 = scmp.lt.s32.totalorder %s42_s11, %s42_s11 }
  0x2c   :  { %p274_p7 = scmp.lt.s32.totalorder %s272_s0, %s268_s20 }
  0x2e   :  { %p275_p8 = por %p274_p7, %p273_p6 }
  0x30   :  { %p276_p9 = pnand %p275_p8, %p269_p5 }
  0x32   :  { %279 = shalt.err (!%p276_p9)
}
  0x33   :  { %44 = dma.hbm_to_vmem [thread:$0]  %s400_s2, 16, %s42_s11, [#allocation6]  }
  0x34   :  { %302 = dma.done.wait [#allocation3], 128  }
  0x35   :  { %303 = vsyncadd [#allocation3], 4294967168 }
  0x36   :  { %304 = dma.done.wait [#allocation6], 528  }
  0x37   :  { %305 = vsyncadd [#allocation6], 4294966768  ;;  %v313_v0 = vmov 0.0   ;;  %vm314_vm0 = vmmov 0   ;;  %vm97_vm1 = vcmask 261120   ;;  %v209_v1 = vld [vmem:[#allocation5] sm:$0xff]  }
  0x38   :  { %187 = vmatprep.subr.bf16.mxu0 %v313_v0  ;;  %195 = vmatprep.mubr.msk.bf16.mxu0 %vm314_vm0, %v313_v0  ;;  %v102_v2 = vsel %vm97_vm1, %v209_v1, 0  ;;  %v210_v3 = vld [vmem:[#allocation5 + $0x8] sm:$0xff]   ;;  %v211_v5 = vld [vmem:[#allocation5 + $0x10] sm:$0xff]   ;;  %v212_v7 = vld [vmem:[#allocation5 + $0x18] sm:$0xff]   ;;  %s315_s2 = smov [#allocation8]   ;;  %vm154_vm2 = vcmask 523264  }
  0x39   :  { %188 = vmatpush3.bf16.xpose.msra.mxu0 %v102_v2  ;;  %v105_v4 = vsel %vm97_vm1, %v210_v3, 0  ;;  %v108_v6 = vsel %vm97_vm1, %v211_v5, 0  ;;  %v111_v8 = vsel %vm97_vm1, %v212_v7, 0  ;;  %v213_v9 = vld [vmem:[#allocation2] sm:$0xff]   ;;  %v175_v10 = vld [vmem:[#allocation7] ss:$0 sm:$0xff] }
  0x3a   :  { %189 = vmatprep.subr.bf16.mxu0 %v313_v0  ;;  %s162_s22 = sshll.u32 %s315_s2, 4  ;;  %s163_s22 = int_to_ptr.vmem [resolvable:$true] %s162_s22 }
  0x3b   :  { %s280_s23 = scalar_lea.vmem %s163_s22, 256  ;;  %p285_p11 = scmp.lt.s32.totalorder %s163_s22, %s163_s22 }
  0x3c   :  { %p281_p10 = scmp.ne.s32.totalorder %s163_s22, %s280_s23  ;;  %p286_p12 = scmp.lt.s32.totalorder %s280_s23, %s280_s23 }
  0x3e   :  { %p287_p13 = por %p286_p12, %p285_p11 }
  0x40   :  { %p288_p0 = pnand %p287_p13, %p281_p10 }
  0x41   :  { %190 = vmatpush3.bf16.xpose.msra.mxu0 %v105_v4 }
  0x42   :  { %191 = vmatprep.subr.bf16.mxu0 %v313_v0 }
  0x49   :  { %192 = vmatpush3.bf16.xpose.msra.mxu0 %v108_v6 }
  0x4a   :  { %193 = vmatprep.subr.bf16.mxu0 %v313_v0 }
  0x51   :  { %194 = vmatpush3.bf16.xpose.msra.mxu0 %v111_v8 }
  0x58   :  { %196 = vmatmul.mubr.msk.bf16.vlgmr.msra.gmra.mrb[0].mxu0 %vm97_vm1, %v213_v9 }
 0x12b   :  { %v147_v11 = vpop.f32.mrb[0].mxu0 }
 0x12c   :  { %v148_v12 = vadd.f32 %v175_v10, %v147_v11  ;;  %v197_v13 = vpop.f32.mrb[1].mxu0 }
 0x12d   :  { %v150_v14 = vpop.f32.mrb[2].mxu0 }
 0x12e   :  { %155 = vst.msk [vmem:[#allocation8] sm:$0xff] %vm154_vm2, %v148_v12  ;;  %v151_v15 = vadd.f32 %v175_v10, %v150_v14  ;;  %v198_v16 = vpop.f32.mrb[3].mxu0 }
 0x130   :  { %156 = vst.msk [vmem:[#allocation8 + $0x8] sm:$0xff] %vm154_vm2, %v151_v15 }
 0x131   :  { %291 = shalt.err (!%p288_p0)
}
 0x132   :  { %s292_s26 = scalar_lea.hbm %s401_s3, 256 }
 0x133   :  { %p293_p1 = scmp.ne.s32.totalorder %s401_s3, %s292_s26  ;;  %p296_p2 = scmp.lt.u32.totalorder %s292_s26, %s401_s3 }
 0x135   :  { %p298_p3 = pnand %p296_p2, %p293_p1 }
 0x137   :  { %301 = shalt.err (!%p298_p3)
}
 0x138   :  { %s316_s4 = smov 128   ;;  %s317_s5 = smov 8  }
 0x139   :  { %168 = dma.vmem_to_hbm [thread:$0]  %s163_s22, 256, %s401_s3, [#allocation4], %s316_s4, %s316_s4, %s317_s5  }
 0x13a   :  { %306 = dma.done.wait [#allocation4], 256  }
 0x13b   :  { %307 = vsyncadd [#allocation4], 4294967040 }
 0x13c   :  { %172 = vsyncpa [#allocation3], 1 }
 0x13d   :  { %173 = vsyncpa [#allocation6], 1 }
 0x13e   :  { %174 = vsyncpa [#allocation4], 1 }

</bundles_post_ra>
